<compile_context>
chip_gen: v6e
topology: v6e:2x2x1
jax: 0.10.0
libtpu: 0.0.40
codegen_flags: <defaults>
</compile_context>

<pallas_src>
import math

import jax
import jax.numpy as jnp
from jax.experimental import pallas as pl
from jax.experimental.pallas import tpu as pltpu


def _round_up(x, m):
    return (x + m - 1) // m * m


_TILE_B_MAX = 4096          # rows per grid step at large batch (multiple of 256)
_SINGLE_TILE_MAX = 1024     # below this, one grid step (tile = padded batch)
_VMEM_LIMIT_BYTES = 32 * 1024 * 1024  # > v5e 16 MiB default, < v7x 64 MiB phys


def _make_fused_mlp_kernel(n_layers):
    """Kernel refs: (x, w0, b0, ..., w_{L-1}, b_{L-1}, out).

    Hidden layers run on the MXU with bf16 operands / f32 accumulation, bias +
    ReLU in f32, activations carried in bf16.  The final 1-unit layer is a VPU
    multiply + XLU lane reduction producing a (tile_b, 1) column directly.
    """

    def kernel(*refs):
        x_ref = refs[0]
        o_ref = refs[-1]
        h = x_ref[...].astype(jnp.bfloat16)          # (tile_b, d_in) -> bf16 for MXU
        for layer in range(n_layers - 1):
            w_ref = refs[1 + 2 * layer]              # (Din, Dout_pad128) bf16
            b_ref = refs[2 + 2 * layer]              # (1, Dout_pad128)   f32
            y = jnp.dot(h, w_ref[...], preferred_element_type=jnp.float32)
            # bias + ReLU in f32 on the VPU (v5e VPU has no bf16); carry bf16.
            h = jnp.maximum(y + b_ref[...], 0.0).astype(jnp.bfloat16)
        # Final layer: only one real output unit -> elementwise mul + lane
        # reduction (no 128-wide MXU pass, no 128x-padded output writeback).
        w_ref = refs[1 + 2 * (n_layers - 1)]         # (1, Dlast_pad128) bf16 row
        b_ref = refs[2 + 2 * (n_layers - 1)]         # (1, 1) f32
        prod = h.astype(jnp.float32) * w_ref[...].astype(jnp.float32)
        col = jnp.sum(prod, axis=-1, keepdims=True)  # (tile_b, 1)
        o_ref[...] = jnp.maximum(col + b_ref[...], 0.0).astype(o_ref.dtype)

    return kernel


def init_params(key, feature_count, hidden_layers_shape):
    """Mimics nn.Linear default init (uniform +-1/sqrt(fan_in)).
    Layer sizes exactly as the PyTorch module builds them:
      [feature_count -> h0 -> ... -> h_last -> 1], ReLU after every layer."""
    dims = [feature_count] + list(hidden_layers_shape) + [1]
    params = []
    for i in range(len(dims) - 1):
        d_in, d_out = dims[i], dims[i + 1]
        key, kw, kb = jax.random.split(key, 3)
        bound = 1.0 / math.sqrt(d_in)
        w = jax.random.uniform(kw, (d_in, d_out), jnp.float32, -bound, bound)
        b = jax.random.uniform(kb, (d_out,), jnp.float32, -bound, bound)
        params.append((w, b))
    return params


def prepare_params(params):
    """One-time prep.  Hidden layers: weights (Din, 128k) bf16 (layer 0 keeps
    the raw feature dim so x needs no pre-padding) and biases (1, 128k) f32,
    zero-filled so the padded math stays exact.  Final layer: weight stored as
    a (1, 128k) bf16 row + (1, 1) f32 bias for the in-kernel mul+reduce."""
    prepped = []
    n = len(params)
    for i, (w, b) in enumerate(params):
        d_in, d_out = w.shape
        pi = d_in if i == 0 else _round_up(d_in, 128)
        if i < n - 1:
            po = _round_up(d_out, 128)
            wp = jnp.zeros((pi, po), jnp.bfloat16)
            wp = wp.at[:d_in, :d_out].set(w.astype(jnp.bfloat16))
            bp = jnp.zeros((1, po), jnp.float32)
            bp = bp.at[0, :d_out].set(b.astype(jnp.float32))
        else:
            assert d_out == 1, "final layer of the module has a single unit"
            wp = jnp.zeros((1, pi), jnp.bfloat16)
            wp = wp.at[0, :d_in].set(w[:, 0].astype(jnp.bfloat16))
            bp = b.reshape(1, 1).astype(jnp.float32)
        prepped.append((wp, bp))
    return prepped


@jax.jit
def neural_network_forward(x, prepped_params):
    """Fused forward: one pallas_call for the whole MLP.  Returns (batch, 1)."""
    batch, d_in = x.shape
    n_layers = len(prepped_params)

    # Batch tiling: single tile for small batches; otherwise tiles that are a
    # multiple of 256 with at least 2 grid steps (feeds both TCs on v7x).
    if batch <= _SINGLE_TILE_MAX:
        tile_b = _round_up(batch, 8)
    else:
        tile_b = min(_TILE_B_MAX, _round_up(pl.cdiv(batch, 2), 256))
    grid_b = pl.cdiv(batch, tile_b)

    flat_inputs = [x]
    in_specs = [pl.BlockSpec((tile_b, d_in), lambda i: (i, 0))]
    for w, b in prepped_params:
        flat_inputs.append(w)
        flat_inputs.append(b)
        # Constant block index -> weights/biases stay VMEM-resident across
        # batch tiles; only activations stream.
        in_specs.append(pl.BlockSpec(w.shape, lambda i: (0, 0)))
        in_specs.append(pl.BlockSpec(b.shape, lambda i: (0, 0)))

    out = pl.pallas_call(
        _make_fused_mlp_kernel(n_layers),
        out_shape=jax.ShapeDtypeStruct((batch, 1), jnp.float32),
        grid=(grid_b,),
        in_specs=in_specs,
        out_specs=pl.BlockSpec((tile_b, 1), lambda i: (i, 0)),
        compiler_params=pltpu.CompilerParams(
            dimension_semantics=("parallel",),
            vmem_limit_bytes=_VMEM_LIMIT_BYTES,
        ),
    )(*flat_inputs)
    return out


if __name__ == "__main__":
    feature_count = 16
    hidden_layers_shape = [32, 32]

    key = jax.random.PRNGKey(0)
    key_x, key_p, key_x2 = jax.random.split(key, 3)
    params = init_params(key_p, feature_count, hidden_layers_shape)
    prepped = prepare_params(params)

    def reference_bf16(xv):
        # Same rounding points as the kernel (bf16 matmul operands, f32 accum).
        h = xv
        for w, b in params:
            y = jnp.dot(h.astype(jnp.bfloat16), w.astype(jnp.bfloat16),
                        preferred_element_type=jnp.float32)
            h = jnp.maximum(y + b, 0.0)
        return h

    # --- small batch: single grid tile ---
    batch = 8
    x = jax.random.normal(key_x, (batch, feature_count), jnp.float32)
    out = neural_network_forward(x, prepped)
    jax.block_until_ready(out)
    assert out.shape == (batch, 1), out.shape
    assert bool(jnp.all(out >= 0.0))  # final ReLU
    assert bool(jnp.allclose(out, reference_bf16(x), atol=1e-3, rtol=1e-3))

    # Plain f32 math of the PyTorch module (loose tolerance: bf16 operands).
    ref = x
    for w, b in params:
        ref = jnp.maximum(ref @ w + b, 0.0)
    assert bool(jnp.allclose(out, ref, atol=1e-1, rtol=1e-1))

    # --- larger batch: exercises the multi-tile "parallel" batch grid ---
    batch2 = 2048
    x2 = jax.random.normal(key_x2, (batch2, feature_count), jnp.float32)
    out2 = neural_network_forward(x2, prepped)
    jax.block_until_ready(out2)
    assert out2.shape == (batch2, 1)
    assert bool(jnp.all(out2 >= 0.0))
    assert bool(jnp.allclose(out2, reference_bf16(x2), atol=1e-3, rtol=1e-3))

    print("KERNEL_OK")
</pallas_src>

<mosaic_0001>
module attributes {stable_mosaic.version = 11 : i64} {
  func.func @kernel(%arg0: i32, %arg1: memref<8x16xf32, #tpu.memory_space<vmem>>, %arg2: memref<16x128xbf16, #tpu.memory_space<vmem>>, %arg3: memref<1x128xf32, #tpu.memory_space<vmem>>, %arg4: memref<128x128xbf16, #tpu.memory_space<vmem>>, %arg5: memref<1x128xf32, #tpu.memory_space<vmem>>, %arg6: memref<1x128xbf16, #tpu.memory_space<vmem>>, %arg7: memref<1x1xf32, #tpu.memory_space<vmem>>, %arg8: memref<8x1xf32, #tpu.memory_space<vmem>>) attributes {dimension_semantics = [#tpu.dimension_semantics<parallel>], iteration_bounds = array<i64: 1>, scalar_prefetch = 0 : i64, scratch_operands = 0 : i64, tpu.core_type = #tpu.core_type<tc>, window_params = [{transform_indices = @transform_0, window_bounds = array<i64: 8, 16>}, {pipeline_mode = #tpu.pipeline_mode<synchronous>, transform_indices = @transform_1, window_bounds = array<i64: 16, 128>}, {pipeline_mode = #tpu.pipeline_mode<synchronous>, transform_indices = @transform_2, window_bounds = array<i64: 1, 128>}, {pipeline_mode = #tpu.pipeline_mode<synchronous>, transform_indices = @transform_3, window_bounds = array<i64: 128, 128>}, {pipeline_mode = #tpu.pipeline_mode<synchronous>, transform_indices = @transform_4, window_bounds = array<i64: 1, 128>}, {pipeline_mode = #tpu.pipeline_mode<synchronous>, transform_indices = @transform_5, window_bounds = array<i64: 1, 128>}, {pipeline_mode = #tpu.pipeline_mode<synchronous>, transform_indices = @transform_6, window_bounds = array<i64: 1, 1>}, {transform_indices = @transform_7, window_bounds = array<i64: 8, 1>}]} {
    %c0 = arith.constant 0 : index
    %c0_0 = arith.constant 0 : index
    %0 = vector.load %arg1[%c0, %c0_0] : memref<8x16xf32, #tpu.memory_space<vmem>>, vector<8x16xf32>
    %1 = arith.truncf %0 : vector<8x16xf32> to vector<8x16xbf16>
    %c0_1 = arith.constant 0 : index
    %c0_2 = arith.constant 0 : index
    %2 = vector.load %arg2[%c0_1, %c0_2] : memref<16x128xbf16, #tpu.memory_space<vmem>>, vector<16x128xbf16>
    %cst = arith.constant dense<0.000000e+00> : vector<8x128xf32>
    %3 = tpu.matmul %1, %2, %cst {dimension_numbers = #tpu.dot_dimension_numbers<[1], [0], [0], [1], [0, 0, 1, 1], [], []>} : vector<8x16xbf16>, vector<16x128xbf16>, vector<8x128xf32> -> vector<8x128xf32>
    %c0_3 = arith.constant 0 : index
    %c0_4 = arith.constant 0 : index
    %4 = vector.load %arg3[%c0_3, %c0_4] : memref<1x128xf32, #tpu.memory_space<vmem>>, vector<1x128xf32>
    %5 = vector.broadcast %4 : vector<1x128xf32> to vector<8x128xf32>
    %6 = arith.addf %3, %5 : vector<8x128xf32>
    %cst_5 = arith.constant 0.000000e+00 : f32
    %7 = vector.broadcast %cst_5 : f32 to vector<8x128xf32>
    %8 = arith.maximumf %6, %7 : vector<8x128xf32>
    %9 = arith.truncf %8 : vector<8x128xf32> to vector<8x128xbf16>
    %c0_6 = arith.constant 0 : index
    %c0_7 = arith.constant 0 : index
    %10 = vector.load %arg4[%c0_6, %c0_7] : memref<128x128xbf16, #tpu.memory_space<vmem>>, vector<128x128xbf16>
    %cst_8 = arith.constant dense<0.000000e+00> : vector<8x128xf32>
    %11 = tpu.matmul %9, %10, %cst_8 {dimension_numbers = #tpu.dot_dimension_numbers<[1], [0], [0], [1], [0, 0, 1, 1], [], []>} : vector<8x128xbf16>, vector<128x128xbf16>, vector<8x128xf32> -> vector<8x128xf32>
    %c0_9 = arith.constant 0 : index
    %c0_10 = arith.constant 0 : index
    %12 = vector.load %arg5[%c0_9, %c0_10] : memref<1x128xf32, #tpu.memory_space<vmem>>, vector<1x128xf32>
    %13 = vector.broadcast %12 : vector<1x128xf32> to vector<8x128xf32>
    %14 = arith.addf %11, %13 : vector<8x128xf32>
    %cst_11 = arith.constant 0.000000e+00 : f32
    %15 = vector.broadcast %cst_11 : f32 to vector<8x128xf32>
    %16 = arith.maximumf %14, %15 : vector<8x128xf32>
    %17 = arith.truncf %16 : vector<8x128xf32> to vector<8x128xbf16>
    %18 = arith.extf %17 : vector<8x128xbf16> to vector<8x128xf32>
    %c0_12 = arith.constant 0 : index
    %c0_13 = arith.constant 0 : index
    %19 = vector.load %arg6[%c0_12, %c0_13] : memref<1x128xbf16, #tpu.memory_space<vmem>>, vector<1x128xbf16>
    %20 = arith.extf %19 : vector<1x128xbf16> to vector<1x128xf32>
    %21 = vector.broadcast %20 : vector<1x128xf32> to vector<8x128xf32>
    %22 = arith.mulf %18, %21 : vector<8x128xf32>
    %cst_14 = arith.constant dense<0.000000e+00> : vector<8xf32>
    %23 = vector.multi_reduction <add>, %22, %cst_14 [1] : vector<8x128xf32> to vector<8xf32>
    %24 = vector.shape_cast %23 : vector<8xf32> to vector<8x1xf32>
    %c0_15 = arith.constant 0 : index
    %c0_16 = arith.constant 0 : index
    %25 = vector.load %arg7[%c0_15, %c0_16] : memref<1x1xf32, #tpu.memory_space<vmem>>, vector<1x1xf32>
    %26 = vector.broadcast %25 : vector<1x1xf32> to vector<8x1xf32>
    %27 = arith.addf %24, %26 : vector<8x1xf32>
    %cst_17 = arith.constant 0.000000e+00 : f32
    %28 = vector.broadcast %cst_17 : f32 to vector<8x1xf32>
    %29 = arith.maximumf %27, %28 : vector<8x1xf32>
    %c0_18 = arith.constant 0 : index
    %c0_19 = arith.constant 0 : index
    %30 = vector.load %arg8[%c0_18, %c0_19] : memref<8x1xf32, #tpu.memory_space<vmem>>, vector<8x1xf32>
    tpu.vector_store %arg8[%c0_18, %c0_19], %29 {strides = array<i32>} : memref<8x1xf32, #tpu.memory_space<vmem>>, vector<8x1xf32>,
    return
  }
  func.func @transform_0(%arg0: i32) -> (i32, i32) {
    %c0_i32 = arith.constant 0 : i32
    %c0_i32_0 = arith.constant 0 : i32
    return %arg0, %c0_i32 : i32, i32
  }
  func.func @transform_1(%arg0: i32) -> (i32, i32) {
    %c0_i32 = arith.constant 0 : i32
    %c0_i32_0 = arith.constant 0 : i32
    %c0_i32_1 = arith.constant 0 : i32
    return %c0_i32, %c0_i32_0 : i32, i32
  }
  func.func @transform_2(%arg0: i32) -> (i32, i32) {
    %c0_i32 = arith.constant 0 : i32
    %c0_i32_0 = arith.constant 0 : i32
    %c0_i32_1 = arith.constant 0 : i32
    return %c0_i32, %c0_i32_0 : i32, i32
  }
  func.func @transform_3(%arg0: i32) -> (i32, i32) {
    %c0_i32 = arith.constant 0 : i32
    %c0_i32_0 = arith.constant 0 : i32
    %c0_i32_1 = arith.constant 0 : i32
    return %c0_i32, %c0_i32_0 : i32, i32
  }
  func.func @transform_4(%arg0: i32) -> (i32, i32) {
    %c0_i32 = arith.constant 0 : i32
    %c0_i32_0 = arith.constant 0 : i32
    %c0_i32_1 = arith.constant 0 : i32
    return %c0_i32, %c0_i32_0 : i32, i32
  }
  func.func @transform_5(%arg0: i32) -> (i32, i32) {
    %c0_i32 = arith.constant 0 : i32
    %c0_i32_0 = arith.constant 0 : i32
    %c0_i32_1 = arith.constant 0 : i32
    return %c0_i32, %c0_i32_0 : i32, i32
  }
  func.func @transform_6(%arg0: i32) -> (i32, i32) {
    %c0_i32 = arith.constant 0 : i32
    %c0_i32_0 = arith.constant 0 : i32
    %c0_i32_1 = arith.constant 0 : i32
    return %c0_i32, %c0_i32_0 : i32, i32
  }
  func.func @transform_7(%arg0: i32) -> (i32, i32) {
    %c0_i32 = arith.constant 0 : i32
    %c0_i32_0 = arith.constant 0 : i32
    return %arg0, %c0_i32 : i32, i32
  }
}

</mosaic_0001>

<bundles_post_ra>
// kernel: neural_network_forward.1
= control target key start
LH: loop header
LB: loop body
LE: loop exit
PB: predicated region body
PF: predicated region fallthrough
CT: control target
= control target key end

     0   :  { %s472_s0 = inlined_call_operand.hbm [shape: f32[8,16], index: 0, kind: input, shape index: {}]   ;;  %s473_s1 = inlined_call_operand.hbm [shape: bf16[16,128], index: 1, kind: input, shape index: {}]   ;;  %s474_s2 = inlined_call_operand.vmem [shape: f32[1,128], index: 2, kind: input, shape index: {}]   ;;  %s475_s3 = inlined_call_operand.hbm [shape: bf16[128,128], index: 3, kind: input, shape index: {}]   ;;  %s476_s4 = inlined_call_operand.vmem [shape: f32[1,128], index: 4, kind: input, shape index: {}]   ;;  %s477_s5 = inlined_call_operand.vmem [shape: bf16[1,128], index: 5, kind: input, shape index: {}]   ;;  %s478_s6 = inlined_call_operand.<no memory space> [shape: f32[1,1], index: 6, kind: input, shape index: {}]   ;;  %s479_s7 = inlined_call_operand.vmem [shape: f32[8,1], index: 7, kind: output, shape index: {}]  }
   0x1   :  { %v12_v0 = vstv %s478_s6 }
   0x2   :  { %13 = vst [vmem:[#allocation2] sm:$0x1] %v12_v0 }
   0x3   :  { %14 = vsyncpa [#allocation4], 0 }
   0x4   :  { %15 = vsyncpa [#allocation6], 0  ;;  %s401_s26 = smov [#allocation5]  }
   0x5   :  { %s31_s27 = sshll.u32 %s401_s26, 4  ;;  %s32_s27 = int_to_ptr.vmem [resolvable:$true] %s31_s27 }
   0x6   :  { %s345_s28 = scalar_lea.vmem %s32_s27, 128  ;;  %p350_p1 = scmp.lt.s32.totalorder %s32_s27, %s32_s27 }
   0x7   :  { %p346_p0 = scmp.ne.s32.totalorder %s32_s27, %s345_s28  ;;  %p351_p2 = scmp.lt.s32.totalorder %s345_s28, %s345_s28 }
   0x9   :  { %p352_p3 = por %p351_p2, %p350_p1 }
   0xb   :  { %p353_p4 = pnand %p352_p3, %p346_p0 }
   0xd   :  { %356 = shalt.err (!%p353_p4)
}
   0xe   :  { %s402_s29 = smov 64   ;;  %s403_s30 = smov 4  }
   0xf   :  { %37 = dma.hbm_to_vmem [thread:$0]  %s473_s1, 128, %s32_s27, [#allocation6], %s402_s29, %s402_s29, %s403_s30  }
  0x10   :  { %s404_s6 = smov [#allocation3]   ;;  %s405_s11 = smov [#allocation7]  }
  0x11   :  { %s22_s10 = sshll.u32 %s404_s6, 4  ;;  %s45_s12 = sshll.u32 %s405_s11, 4  ;;  %s23_s10 = int_to_ptr.vmem [resolvable:$true] %s22_s10  ;;  %s46_s12 = int_to_ptr.vmem [resolvable:$true] %s45_s12 }
  0x12   :  { %s365_s13 = scalar_lea.vmem %s23_s10, 128  ;;  %p370_p6 = scmp.lt.s32.totalorder %s23_s10, %s23_s10 }
  0x13   :  { %p366_p5 = scmp.ne.s32.totalorder %s23_s10, %s365_s13  ;;  %p371_p7 = scmp.lt.s32.totalorder %s365_s13, %s365_s13 }
  0x15   :  { %p372_p8 = por %p371_p7, %p370_p6 }
  0x17   :  { %p373_p9 = pnand %p372_p8, %p366_p5 }
  0x19   :  { %376 = shalt.err (!%p373_p9)
}
  0x1a   :  { %25 = dma.hbm_to_vmem [thread:$0]  %s472_s0, 128, %s23_s10, [#allocation4]  }
  0x1b   :  { %s385_s16 = scalar_lea.vmem %s46_s12, 1024  ;;  %p390_p11 = scmp.lt.s32.totalorder %s46_s12, %s46_s12 }
  0x1c   :  { %p386_p10 = scmp.ne.s32.totalorder %s46_s12, %s385_s16  ;;  %p391_p12 = scmp.lt.s32.totalorder %s385_s16, %s385_s16 }
  0x1e   :  { %p392_p13 = por %p391_p12, %p390_p11 }
  0x20   :  { %p393_p0 = pnand %p392_p13, %p386_p10 }
  0x22   :  { %396 = shalt.err (!%p393_p0)
}
  0x23   :  { %51 = dma.hbm_to_vmem [thread:$0]  %s475_s3, 1024, %s46_s12, [#allocation6], %s402_s29, %s402_s29, %s403_s30  }
  0x24   :  { %397 = dma.done.wait [#allocation4], 128  }
  0x25   :  { %398 = vsyncadd [#allocation4], 4294967168 }
  0x26   :  { %399 = dma.done.wait [#allocation6], 1152  }
  0x27   :  { %400 = vsyncadd [#allocation6], 4294966144  ;;  %v406_v1 = vmov 0.0   ;;  %vm407_vm0 = vmmov 0   ;;  %v328_v2 = vld [vmem:[#allocation5] sm:$0xff]   ;;  %v68_v3 = vld [vmem:[#allocation3] sm:$0xff]  ;;  %v247_v21 = vlaneseq }
  0x28   :  { %295 = vmatprep.subr.bf16.mxu0 %v406_v1  ;;  %297 = vmatprep.mubr.msk.bf16.mxu0 %vm407_vm0, %v406_v1  ;;  %v69_v4 = vpack.c.bf16 %v68_v3, %v68_v3  ;;  %vm85_vm1 = vcmask 130048   ;;  %v329_v5 = vld [vmem:[#allocation7 + $0x38] sm:$0xff]   ;;  %v330_v6 = vld [vmem:[#allocation7 + $0x30] sm:$0xff]   ;;  %v331_v7 = vld [vmem:[#allocation7 + $0x28] sm:$0xff]   ;;  %vm263_vm2 = vcmask 7168  }
  0x29   :  { %301 = vmatprep.subr.bf16.mxu1 %v406_v1  ;;  %317 = vmatprep.mubr.msk.bf16.mxu1 %vm407_vm0, %v406_v1  ;;  %v332_v8 = vld [vmem:[#allocation7 + $0x20] sm:$0xff]   ;;  %v333_v9 = vld [vmem:[#allocation7 + $0x18] sm:$0xff]   ;;  %v334_v10 = vld [vmem:[#allocation7 + $0x10] sm:$0xff]   ;;  %v248_v22 = vshrl.u32 %v247_v21, 7 }
  0x2a   :  { %296 = vmatpush3.bf16.msra.mxu0 %v328_v2  ;;  %302 = vmatpush3.bf16.msra.mxu1 %v329_v5  ;;  %v335_v11 = vld [vmem:[#allocation7 + $0x8] sm:$0xff]   ;;  %v336_v12 = vld [vmem:[#allocation7] sm:$0xff]  }
  0x2b   :  { %303 = vmatprep.subr.bf16.mxu1 %v406_v1  ;;  %v271_v13 = vld [vmem:[%s474_s2] ss:$0 sm:$0xff]  ;;  %v249_v28 = vsub.s32 0, %v248_v22 }
  0x2c   :  { %v274_v23 = vld [vmem:[%s476_s4] ss:$0 sm:$0xff] }
  0x2d   :  { %298 = vmatmul.mubr.msk.bf16.vlgmr.msra.gmra.mxu0 %vm85_vm1, %v69_v4  ;;  %v245_v24 = vld [vmem:[%s477_s5] sm:$0x1] }
  0x2e   :  { %304 = vmatpush3.bf16.msra.mxu1 %v330_v6  ;;  %v246_v27 = vunpack.c.l.bf16 %v245_v24  ;;  %v283_v37 = vld [vmem:[#allocation2] ss:$0 sm:$0xff] }
  0x2f   :  { %305 = vmatprep.subr.bf16.mxu1 %v406_v1 }
  0x30   :  { %v250_v33 = vrot.slane %v246_v27, %v249_v28 }
  0x32   :  { %306 = vmatpush3.bf16.msra.mxu1 %v331_v7 }
  0x33   :  { %307 = vmatprep.subr.bf16.mxu1 %v406_v1 }
  0x36   :  { %308 = vmatpush3.bf16.msra.mxu1 %v332_v8 }
  0x37   :  { %309 = vmatprep.subr.bf16.mxu1 %v406_v1 }
  0x3a   :  { %310 = vmatpush3.bf16.msra.mxu1 %v333_v9 }
  0x3b   :  { %311 = vmatprep.subr.bf16.mxu1 %v406_v1 }
  0x3e   :  { %312 = vmatpush3.bf16.msra.mxu1 %v334_v10 }
  0x3f   :  { %313 = vmatprep.subr.bf16.mxu1 %v406_v1 }
  0x42   :  { %314 = vmatpush3.bf16.msra.mxu1 %v335_v11 }
  0x43   :  { %315 = vmatprep.subr.bf16.mxu1 %v406_v1 }
  0x46   :  { %316 = vmatpush3.bf16.msra.mxu1 %v336_v12 }
  0xed   :  { %v123_v14 = vpop.f32.mrf.mxu0 }
  0xee   :  { %v124_v15 = vadd.f32 %v271_v13, %v123_v14 }
  0xef   :  { %v299_v16 = vpop.f32.mrf.mxu0 }
  0xf0   :  { %v129_v17 = vmax.f32 %v124_v15, 0.0 }
  0xf1   :  { %v126_v18 = vpop.f32.mrf.mxu0 }
  0xf2   :  { %v130_v19 = vpack.c.bf16 %v129_v17, %v129_v17 }
  0xf3   :  { %v300_v20 = vpop.f32.mrf.mxu0 }
  0xf4   :  { %318 = vmatmul.mubr.bf16.vlgmr.msra.gmra.mxu1 %v130_v19 }
 0x1b4   :  { %v236_v25 = vpop.f32.mrf.mxu1 }
 0x1b5   :  { %v237_v26 = vadd.f32 %v274_v23, %v236_v25 }
 0x1b6   :  { %v319_v29 = vpop.f32.mrf.mxu1 }
 0x1b7   :  { %v242_v30 = vmax.f32 %v237_v26, 0.0 }
 0x1b8   :  { %v239_v31 = vpop.f32.mrf.mxu1 }
 0x1b9   :  { %v243_v32 = vpack.c.bf16 %v242_v30, %v242_v30 }
 0x1ba   :  { %v320_v34 = vpop.f32.mrf.mxu1 }
 0x1bb   :  { %v244_v35 = vunpack.c.l.bf16 %v243_v32 }
 0x1bd   :  { %v251_v36 = vmul.f32 %v250_v33, %v244_v35 }
 0x1bf   :  { %252 = vadd.xlane.f32.xlu0 %v251_v36 }
 0x248   :  { %v253_v38 = vpop.xlane.xlu0 %252 }
 0x249   :  { %v261_v39 = vadd.f32 %v283_v37, %v253_v38 }
 0x24b   :  { %v262_v40 = vmax.f32 %v261_v39, 0.0 }
 0x24d   :  { %264 = vst.msk [vmem:[%s479_s7] sm:$0xff] %vm263_vm2, %v262_v40 }
 0x24e   :  { %269 = vsyncpa [#allocation4], 1 }
 0x24f   :  { %270 = vsyncpa [#allocation6], 1 }

</bundles_post_ra>
